<compile_context>
chip_gen: v5e
topology: v5e:2x2
jax: 0.10.0
libtpu: 0.0.40
codegen_flags: <defaults>
</compile_context>

<pallas_src>
import functools

import jax
import jax.numpy as jnp
from jax.experimental import pallas as pl
from jax.experimental.pallas import tpu as pltpu

LN_EPS = 1e-5  # nn.LayerNorm default


def _round_up(a, b):
    return (a + b - 1) // b * b


def _patch_embed_kernel(x_ref, w_ref, b_ref, g_ref, bt_ref, o_ref, *, e_true):
    # Projection: patchified conv == matmul on the MXU, fp32 accumulation.
    y = jnp.dot(x_ref[...], w_ref[...], preferred_element_type=jnp.float32)
    y = y + b_ref[...]  # bias in f32

    # One-pass LayerNorm statistics over the TRUE embed_dim.  Padded columns
    # (>= e_true) are exactly zero (zero-padded weight & bias), so sum(y) and
    # sum(y*y) over the padded row equal the sums over the true columns; no
    # iota/where mask is needed.  Biased variance + eps, like torch.nn.LayerNorm.
    inv_e = jnp.float32(1.0 / e_true)
    mean = jnp.sum(y, axis=-1, keepdims=True) * inv_e
    var = jnp.sum(y * y, axis=-1, keepdims=True) * inv_e - mean * mean
    var = jnp.maximum(var, 0.0)  # guard one-pass cancellation
    y_hat = (y - mean) * jax.lax.rsqrt(var + LN_EPS)
    o_ref[...] = (y_hat * g_ref[...] + bt_ref[...]).astype(o_ref.dtype)


def patch_embed_forward(x, w_conv, b_conv, gamma, beta, patch_size, *,
                        tm=1024, compute_dtype=jnp.bfloat16):
    """x: NCHW float array. Returns (tokens[B, N, E], (Hp, Wp))."""
    B, C, H, W = x.shape
    p = patch_size
    assert H % p == 0 and W % p == 0
    Hp, Wp = H // p, W // p
    E = w_conv.shape[0]
    K = C * p * p
    M = B * Hp * Wp

    # --- glue: patchify (B, C, H, W) -> (M, K) with K ordered as (C, p_h, p_w),
    # matching PyTorch Conv2d weight flatten order.  Cast to the (bf16) compute
    # dtype here; allow_input_fusion lets XLA fuse this into the kernel's input
    # copy rather than round-tripping xp through HBM. ---
    xp = x.reshape(B, C, Hp, p, Wp, p)
    xp = jnp.transpose(xp, (0, 2, 4, 1, 3, 5))  # (B, Hp, Wp, C, p, p)
    xp = xp.reshape(M, K).astype(compute_dtype)

    # Lane-dense E: pad weight / bias / affine params with zeros up to 128 lanes.
    E_pad = _round_up(E, 128)
    w = w_conv.reshape(E, K).T.astype(compute_dtype)  # (K, E)
    if E_pad != E:
        w = jnp.pad(w, ((0, 0), (0, E_pad - E)))

    def _row(v):
        v = v.astype(jnp.float32)
        if E_pad != E:
            v = jnp.pad(v, (0, E_pad - E))
        return v.reshape(1, E_pad)

    b2, g2, bt2 = _row(b_conv), _row(gamma), _row(beta)

    in_bytes = jnp.dtype(compute_dtype).itemsize
    out_bytes = jnp.dtype(x.dtype).itemsize

    # Tile size over M: at least 2 grid steps so the "parallel" axis actually
    # engages both TensorCores on v7x; multiple of 8 for (8,128) legality.
    TM = max(8, min(int(tm), _round_up(pl.cdiv(M, 2), 8)))

    # Keep the pipelined working set inside a conservative VMEM budget
    # (sized for v7x's 64 MiB physical / 32 MiB default scoped VMEM).
    def _vmem_estimate(tm_):
        return (2 * tm_ * K * in_bytes          # x tiles (double-buffered)
                + K * E_pad * in_bytes          # weight (single-buffered)
                + 3 * 2 * E_pad * 4             # bias / gamma / beta
                + 2 * tm_ * E_pad * out_bytes)  # output tiles (double-buffered)

    VMEM_BUDGET = 24 << 20
    while TM > 8 and _vmem_estimate(TM) > VMEM_BUDGET:
        TM = max(8, _round_up(TM // 2, 8))

    M_pad = _round_up(M, TM)
    if M_pad != M:
        xp = jnp.pad(xp, ((0, M_pad - M), (0, 0)))

    vmem_limit_bytes = int(min(64 << 20,
                               max(2 * _vmem_estimate(TM) + (4 << 20), 32 << 20)))

    kernel = functools.partial(_patch_embed_kernel, e_true=E)
    resident = pl.Buffered(buffer_count=1)  # grid-invariant: single VMEM buffer

    out = pl.pallas_call(
        kernel,
        out_shape=jax.ShapeDtypeStruct((M_pad, E_pad), x.dtype),
        grid=(M_pad // TM,),
        in_specs=[
            pl.BlockSpec((TM, K), lambda i: (i, 0)),        # x tile streams over M
            pl.BlockSpec((K, E_pad), lambda i: (0, 0),      # weight: VMEM-resident
                         pipeline_mode=resident),
            pl.BlockSpec((1, E_pad), lambda i: (0, 0),      # bias
                         pipeline_mode=resident),
            pl.BlockSpec((1, E_pad), lambda i: (0, 0),      # gamma
                         pipeline_mode=resident),
            pl.BlockSpec((1, E_pad), lambda i: (0, 0),      # beta
                         pipeline_mode=resident),
        ],
        out_specs=pl.BlockSpec((TM, E_pad), lambda i: (i, 0)),
        compiler_params=pltpu.CompilerParams(
            dimension_semantics=("parallel",),               # megacore on v7x
            allow_input_fusion=[True, True, True, True, True],
            vmem_limit_bytes=vmem_limit_bytes,
        ),
    )(xp, w, b2, g2, bt2)

    # Skip the post-kernel copy entirely when no padding was added.
    if M_pad != M or E_pad != E:
        out = out[:M, :E]
    tokens = out.reshape(B, Hp * Wp, E)
    return tokens, (Hp, Wp)


def _reference(x, w_conv, b_conv, gamma, beta, patch_size):
    # Pure-JAX reference: strided conv + layernorm, all f32.
    y = jax.lax.conv_general_dilated(
        x, w_conv, window_strides=(patch_size, patch_size), padding="VALID",
        dimension_numbers=("NCHW", "OIHW", "NCHW"))
    y = y + b_conv[None, :, None, None]
    B, E, Hp, Wp = y.shape
    y = y.reshape(B, E, Hp * Wp).transpose(0, 2, 1)  # (B, N, E)
    mean = jnp.mean(y, axis=-1, keepdims=True)
    var = jnp.mean((y - mean) ** 2, axis=-1, keepdims=True)
    y = (y - mean) / jnp.sqrt(var + LN_EPS)
    return y * gamma + beta, (Hp, Wp)


if __name__ == "__main__":
    # Small shapes consistent with the module: B=2, C=4, 16x16 image, 4x4 patches, E=32.
    B, C, H, W = 2, 4, 16, 16
    patch_size = 4
    E = 32

    key = jax.random.PRNGKey(0)
    kx, kw, kb, kg, kbt = jax.random.split(key, 5)
    x = jax.random.normal(kx, (B, C, H, W), dtype=jnp.float32)
    w_conv = jax.random.normal(kw, (E, C, patch_size, patch_size), dtype=jnp.float32) * 0.05
    b_conv = jax.random.normal(kb, (E,), dtype=jnp.float32) * 0.05
    gamma = jnp.ones((E,), dtype=jnp.float32) + 0.1 * jax.random.normal(kg, (E,), dtype=jnp.float32)
    beta = 0.1 * jax.random.normal(kbt, (E,), dtype=jnp.float32)

    fwd = jax.jit(patch_embed_forward,
                  static_argnames=("patch_size", "tm", "compute_dtype"))

    ref, (Hr, Wr) = _reference(x, w_conv, b_conv, gamma, beta, patch_size)
    N = (H // patch_size) * (W // patch_size)

    # 1) Exact-precision path (f32 compute): tight tolerance against the reference.
    tok_f32, (Hp, Wp) = fwd(x, w_conv, b_conv, gamma, beta,
                            patch_size=patch_size, compute_dtype=jnp.float32)
    tok_f32 = jax.block_until_ready(tok_f32)
    assert tok_f32.shape == (B, N, E)
    assert (int(Hp), int(Wp)) == (Hr, Wr)
    assert jnp.allclose(tok_f32, ref, atol=1e-3, rtol=1e-3)

    # 2) Performance path (bf16 inputs to the MXU, f32 accumulation + f32 LayerNorm).
    tok_bf16, (Hp2, Wp2) = fwd(x, w_conv, b_conv, gamma, beta,
                               patch_size=patch_size)  # compute_dtype=bf16 default
    tok_bf16 = jax.block_until_ready(tok_bf16)
    assert tok_bf16.shape == (B, N, E)
    assert (int(Hp2), int(Wp2)) == (Hr, Wr)
    assert jnp.allclose(tok_bf16, ref, atol=3e-2, rtol=3e-2)

    print("KERNEL_OK")
</pallas_src>

<mosaic_0001>
module attributes {stable_mosaic.version = 11 : i64} {
  func.func @_patch_embed_kernel(%arg0: i32, %arg1: memref<16x64xf32, #tpu.memory_space<vmem>>, %arg2: memref<64x128xf32, #tpu.memory_space<vmem>>, %arg3: memref<1x128xf32, #tpu.memory_space<vmem>>, %arg4: memref<1x128xf32, #tpu.memory_space<vmem>>, %arg5: memref<1x128xf32, #tpu.memory_space<vmem>>, %arg6: memref<16x128xf32, #tpu.memory_space<vmem>>) attributes {dimension_semantics = [#tpu.dimension_semantics<parallel>], iteration_bounds = array<i64: 2>, scalar_prefetch = 0 : i64, scratch_operands = 0 : i64, tpu.core_type = #tpu.core_type<tc>, window_params = [{transform_indices = @transform_0, window_bounds = array<i64: 16, 64>}, {pipeline_mode = #tpu.pipeline_mode<synchronous>, transform_indices = @transform_1, window_bounds = array<i64: 64, 128>}, {pipeline_mode = #tpu.pipeline_mode<synchronous>, transform_indices = @transform_2, window_bounds = array<i64: 1, 128>}, {pipeline_mode = #tpu.pipeline_mode<synchronous>, transform_indices = @transform_3, window_bounds = array<i64: 1, 128>}, {pipeline_mode = #tpu.pipeline_mode<synchronous>, transform_indices = @transform_4, window_bounds = array<i64: 1, 128>}, {transform_indices = @transform_5, window_bounds = array<i64: 16, 128>}]} {
    %c0 = arith.constant 0 : index
    %c0_0 = arith.constant 0 : index
    %0 = vector.load %arg1[%c0, %c0_0] : memref<16x64xf32, #tpu.memory_space<vmem>>, vector<16x64xf32>
    %c0_1 = arith.constant 0 : index
    %c0_2 = arith.constant 0 : index
    %1 = vector.load %arg2[%c0_1, %c0_2] : memref<64x128xf32, #tpu.memory_space<vmem>>, vector<64x128xf32>
    %cst = arith.constant dense<0.000000e+00> : vector<16x128xf32>
    %2 = tpu.matmul %0, %1, %cst {dimension_numbers = #tpu.dot_dimension_numbers<[1], [0], [0], [1], [0, 0, 1, 1], [], []>} : vector<16x64xf32>, vector<64x128xf32>, vector<16x128xf32> -> vector<16x128xf32>
    %c0_3 = arith.constant 0 : index
    %c0_4 = arith.constant 0 : index
    %3 = vector.load %arg3[%c0_3, %c0_4] : memref<1x128xf32, #tpu.memory_space<vmem>>, vector<1x128xf32>
    %4 = vector.broadcast %3 : vector<1x128xf32> to vector<16x128xf32>
    %5 = arith.addf %2, %4 : vector<16x128xf32>
    %cst_5 = arith.constant dense<0.000000e+00> : vector<16xf32>
    %6 = vector.multi_reduction <add>, %5, %cst_5 [1] : vector<16x128xf32> to vector<16xf32>
    %7 = vector.shape_cast %6 : vector<16xf32> to vector<16x1xf32>
    %cst_6 = arith.constant 3.125000e-02 : f32
    %8 = vector.broadcast %cst_6 : f32 to vector<16x1xf32>
    %9 = arith.mulf %7, %8 : vector<16x1xf32>
    %10 = arith.mulf %5, %5 : vector<16x128xf32>
    %cst_7 = arith.constant dense<0.000000e+00> : vector<16xf32>
    %11 = vector.multi_reduction <add>, %10, %cst_7 [1] : vector<16x128xf32> to vector<16xf32>
    %12 = vector.shape_cast %11 : vector<16xf32> to vector<16x1xf32>
    %cst_8 = arith.constant 3.125000e-02 : f32
    %13 = vector.broadcast %cst_8 : f32 to vector<16x1xf32>
    %14 = arith.mulf %12, %13 : vector<16x1xf32>
    %15 = arith.mulf %9, %9 : vector<16x1xf32>
    %16 = arith.subf %14, %15 : vector<16x1xf32>
    %cst_9 = arith.constant 0.000000e+00 : f32
    %17 = vector.broadcast %cst_9 : f32 to vector<16x1xf32>
    %18 = arith.maximumf %16, %17 : vector<16x1xf32>
    %19 = vector.broadcast %9 : vector<16x1xf32> to vector<16x128xf32>
    %20 = arith.subf %5, %19 : vector<16x128xf32>
    %cst_10 = arith.constant 9.99999974E-6 : f32
    %21 = vector.broadcast %cst_10 : f32 to vector<16x1xf32>
    %22 = arith.addf %18, %21 : vector<16x1xf32>
    %23 = math.rsqrt %22 : vector<16x1xf32>
    %24 = vector.broadcast %23 : vector<16x1xf32> to vector<16x128xf32>
    %25 = arith.mulf %20, %24 : vector<16x128xf32>
    %c0_11 = arith.constant 0 : index
    %c0_12 = arith.constant 0 : index
    %26 = vector.load %arg4[%c0_11, %c0_12] : memref<1x128xf32, #tpu.memory_space<vmem>>, vector<1x128xf32>
    %27 = vector.broadcast %26 : vector<1x128xf32> to vector<16x128xf32>
    %28 = arith.mulf %25, %27 : vector<16x128xf32>
    %c0_13 = arith.constant 0 : index
    %c0_14 = arith.constant 0 : index
    %29 = vector.load %arg5[%c0_13, %c0_14] : memref<1x128xf32, #tpu.memory_space<vmem>>, vector<1x128xf32>
    %30 = vector.broadcast %29 : vector<1x128xf32> to vector<16x128xf32>
    %31 = arith.addf %28, %30 : vector<16x128xf32>
    %c0_15 = arith.constant 0 : index
    %c0_16 = arith.constant 0 : index
    %32 = vector.load %arg6[%c0_15, %c0_16] : memref<16x128xf32, #tpu.memory_space<vmem>>, vector<16x128xf32>
    tpu.vector_store %arg6[%c0_15, %c0_16], %31 {strides = array<i32>} : memref<16x128xf32, #tpu.memory_space<vmem>>, vector<16x128xf32>,
    return
  }
  func.func @transform_0(%arg0: i32) -> (i32, i32) {
    %c0_i32 = arith.constant 0 : i32
    %c0_i32_0 = arith.constant 0 : i32
    return %arg0, %c0_i32 : i32, i32
  }
  func.func @transform_1(%arg0: i32) -> (i32, i32) {
    %c0_i32 = arith.constant 0 : i32
    %c0_i32_0 = arith.constant 0 : i32
    %c0_i32_1 = arith.constant 0 : i32
    return %c0_i32, %c0_i32_0 : i32, i32
  }
  func.func @transform_2(%arg0: i32) -> (i32, i32) {
    %c0_i32 = arith.constant 0 : i32
    %c0_i32_0 = arith.constant 0 : i32
    %c0_i32_1 = arith.constant 0 : i32
    return %c0_i32, %c0_i32_0 : i32, i32
  }
  func.func @transform_3(%arg0: i32) -> (i32, i32) {
    %c0_i32 = arith.constant 0 : i32
    %c0_i32_0 = arith.constant 0 : i32
    %c0_i32_1 = arith.constant 0 : i32
    return %c0_i32, %c0_i32_0 : i32, i32
  }
  func.func @transform_4(%arg0: i32) -> (i32, i32) {
    %c0_i32 = arith.constant 0 : i32
    %c0_i32_0 = arith.constant 0 : i32
    %c0_i32_1 = arith.constant 0 : i32
    return %c0_i32, %c0_i32_0 : i32, i32
  }
  func.func @transform_5(%arg0: i32) -> (i32, i32) {
    %c0_i32 = arith.constant 0 : i32
    %c0_i32_0 = arith.constant 0 : i32
    return %arg0, %c0_i32 : i32, i32
  }
}

</mosaic_0001>

<bundles_post_ra>
// kernel: patch_embed_forward.2
= control target key start
LH: loop header
LB: loop body
LE: loop exit
PB: predicated region body
PF: predicated region fallthrough
CT: control target
= control target key end

     0   :  { %s847_s0 = inlined_call_operand.vmem [shape: f32[32,64], index: 0, kind: input, shape index: {}]   ;;  %s848_s1 = inlined_call_operand.vmem [shape: f32[64,32], index: 1, kind: input, shape index: {}]   ;;  %s849_s2 = inlined_call_operand.<no memory space> [shape: f32[], index: 2, kind: input, shape index: {}]   ;;  %s850_s3 = inlined_call_operand.vmem [shape: f32[32], index: 3, kind: input, shape index: {}]   ;;  %s851_s4 = inlined_call_operand.vmem [shape: f32[32], index: 4, kind: input, shape index: {}]   ;;  %s852_s5 = inlined_call_operand.vmem [shape: f32[32], index: 5, kind: input, shape index: {}]   ;;  %s853_s6 = inlined_call_operand.hbm [shape: f32[32,128], index: 6, kind: output, shape index: {}]  }
   0x1   :  { %v705_v0 = vstv %s849_s2 }
   0x2   :  { %15 = vsyncpa [#allocation23], 0 }
   0x3   :  { %17 = vsyncpa [#allocation23 + $0x1], 0  ;;  %s707_s23 = smov 0   ;;  %s709_s24 = smov 0  }
   0x4   :  { %s711_s25 = smov 0   ;;  %s713_s26 = smov 0  }
   0x5 LB: > { %s728_s2 = sadd.s32 4294967295, %s663_s26   ;;  %s523_s27 = sadd.s32 4294967294, %s663_s26   ;;  %s663_s26 = sphi %s713_s26, %s859_s26   ;;  %s659_s25 = sphi %s711_s25, %s858_s25   ;;  %s655_s24 = sphi %s709_s24, %s857_s24   ;;  %s651_s23 = sphi %s707_s23, %s856_s23  }
   0x6   : > { %s732_s28 = sadd.s32 1, %s663_s26   ;;  %s140_s29 = sadd.s32 1, %s659_s25 }
   0x7   : > { %s137_s30 = ssub.s32 %s663_s26, %s732_s28  ;;  %p150_p0 = scmp.ne.s32.totalorder %s659_s25, %s655_s24 }
   0x8   : > { %p138_p1 = scmp.eq.s32.totalorder %s137_s30, 0  ;;  %p151_p2 = scmp.eq.s32.totalorder %s728_s2, 1 }
   0x9   : > { %p156_p3 = scmp.ne.s32.totalorder %s655_s24, %s651_s23  ;;  %p157_p4 = scmp.eq.s32.totalorder %s523_s27, 1 }
   0xa   : > { %s743_s7 = scalar_select %p138_p1, %s659_s25, %s140_s29  }
   0xb   : > { %p745_p5 = por %p151_p2, %p150_p0  ;;  %p749_p6 = por %p157_p4, %p156_p3 }
   0xc   : > { %p526_p7 = scmp.ge.s32.totalorder %s663_s26, 1  ;;  %p196_p8 = scmp.lt.s32.totalorder %s663_s26, 3 }
   0xe   : > { %p197_p9 = pnand %p526_p7, %p196_p8 }
  0x10   : > { %200 = sbr.rel (%p197_p9) target bundleno = 332 (0x14c), region = 40 }
  0x15   : > { %v232_v1 = vlaneseq  ;;  %v317_v2 = vld [vmem:[%s852_s5] sm:$0x1]  ;;  %s528_s16 = sshll.u32 %s728_s2, 1  ;;  %v536_v6 = vld [vmem:[%s848_s1 + $0x38] sm:$0xff]  ;;  %v535_v7 = vld [vmem:[%s848_s1 + $0x30] sm:$0xff]  ;;  %vm355_vm2 = vcmask 523264  }
  0x16   : > { %v325_v3 = vld [vmem:[%s851_s4] sm:$0x1]  ;;  %v534_v11 = vld [vmem:[%s848_s1 + $0x28] sm:$0xff]  ;;  %p225_p10 = scmp.lt.s32.totalorder %s528_s16, 3  ;;  %v532_v16 = vld [vmem:[%s848_s1 + $0x18] sm:$0xff]  ;;  %s544_s27 = sshll.u32 %s728_s2, 4 }
  0x17   : > { %v333_v4 = vld [vmem:[%s850_s3] sm:$0x1]  ;;  %v233_v5 = vand.u32 127, %v232_v1  ;;  %vm320_vm0 = vcmp.lt.s32.totalorder %v232_v1, 32  ;;  %v531_v18 = vld [vmem:[%s848_s1 + $0x10] sm:$0xff]  ;;  %v530_v20 = vld [vmem:[%s848_s1 + $0x8] sm:$0xff]  ;;  %s457_s11 = scalar_lea.hbm %s853_s6, %s544_s27 }
  0x18   : > { %v321_v8 = vsel %vm320_vm0, %v317_v2, %v705_v0  ;;  %v329_v9 = vsel %vm320_vm0, %v325_v3, %v705_v0  ;;  %v337_v10 = vsel %vm320_vm0, %v333_v4, %v705_v0  ;;  %v533_v14 = vld [vmem:[%s848_s1 + $0x20] sm:$0xff]  ;;  %s861_s16 = smov (!%p225_p10, %s528_s16), 3  ;;  %s460_s13 = sshll.u32 %s457_s11, 4  ;;  %s461_s13 = int_to_ptr.hbm [resolvable:$true] %s460_s13 }
  0x19   : > { %vm235_vm1 = vcmp.lt.s32.totalorder %v233_v5, 32  ;;  %324 = vst [vmem:[#allocation25] sm:$0x1] %v321_v8  ;;  %s529_s15 = sshll.u32 %s861_s16, 3  ;;  %v231_v22 = vld [vmem:[%s848_s1] sm:$0xff]  ;;  %s221_s16 = sand.u32 1, %s655_s24  }
  0x1a   : > { %v312_v12 = vsel %vm235_vm1, %v536_v6, %v705_v0  ;;  %332 = vst [vmem:[#allocation26] sm:$0x1] %v329_v9  ;;  %v301_v13 = vsel %vm235_vm1, %v535_v7, %v705_v0  ;;  %v290_v15 = vsel %vm235_vm1, %v534_v11, %v705_v0  ;;  %v279_v17 = vsel %vm235_vm1, %v533_v14, %v705_v0  ;;  %s228_s21 = scalar_lea.vmem %s847_s0, %s529_s15  ;;  %s527_s22 = sshll.u32 %s221_s16, 4 }
  0x1b   : > { %340 = vst [vmem:[#allocation27] sm:$0x1] %v337_v10  ;;  %370 = vmatpush.msra.mxu0 %v312_v12  ;;  %545 = vmatpush.msra.mxu1 %v312_v12  ;;  %v268_v19 = vsel %vm235_vm1, %v532_v16, %v705_v0  ;;  %v257_v21 = vsel %vm235_vm1, %v531_v18, %v705_v0  ;;  %v341_v25 = vld [vmem:[%s228_s21] sm:$0xff]  ;;  %v342_v26 = vld [vmem:[%s228_s21 + $0x8] sm:$0xff]  ;;  %s223_s29 = scalar_lea.vmem [#allocation22], %s527_s22  ;;  %s446_s2 = scalar_lea.sflag [#allocation23], %s221_s16 }
  0x1c   : > { %v246_v23 = vsel %vm235_vm1, %v530_v20, %v705_v0  ;;  %v236_v24 = vsel %vm235_vm1, %v231_v22, %v705_v0  ;;  %s458_s12 = sshll.u32 %s223_s29, 4  ;;  %s615_s14 = sshra.s32 %s461_s13, 4  ;;  %s459_s12 = int_to_ptr.vmem [resolvable:$true] %s458_s12  ;;  %s616_s14 = int_to_ptr.hbm [resolvable:$true] %s615_s14 }
  0x1d   : > { %371 = vmatpush.msra.mxu0 %v301_v13  ;;  %546 = vmatpush.msra.mxu1 %v301_v13  ;;  %s617_s15 = scalar_lea.hbm %s616_s14, 16  ;;  %s621_s19 = scalar_lea.hbm %s853_s6, 32 }
  0x1e   : > { %p618_p11 = scmp.ne.s32.totalorder %s616_s14, %s617_s15  ;;  %p622_p0 = scmp.lt.s32.totalorder %s616_s14, %s853_s6 }
  0x1f   : > { %372 = vmatpush.msra.mxu0 %v290_v15  ;;  %547 = vmatpush.msra.mxu1 %v290_v15  ;;  %p623_p1 = scmp.lt.s32.totalorder %s621_s19, %s617_s15 }
  0x20   : > { %v594_v27 = vld [vmem:[#allocation25] ss:$0 sm:$0xff]  ;;  %p619_p12 = pnand %p618_p11, %p745_p5 }
  0x21   : > { %373 = vmatpush.msra.mxu0 %v279_v17  ;;  %548 = vmatpush.msra.mxu1 %v279_v17  ;;  %v595_v58 = vld [vmem:[#allocation26] ss:$0 sm:$0xff]  ;;  %p624_p2 = por %p623_p1, %p622_p0 }
  0x22   : > { %v596_v63 = vld [vmem:[#allocation27] ss:$0 sm:$0xff]  ;;  %p620_p13 = pneg %p619_p12 }
  0x23   : > { %374 = vmatpush.msra.mxu0 %v268_v19  ;;  %549 = vmatpush.msra.mxu1 %v268_v19 }
  0x24   : > { %p625_p3 = pnand %p624_p2, %p620_p13 }
  0x25   : > { %375 = vmatpush.msra.mxu0 %v257_v21  ;;  %550 = vmatpush.msra.mxu1 %v257_v21 }
  0x27   : > { %376 = vmatpush.msra.mxu0 %v246_v23  ;;  %551 = vmatpush.msra.mxu1 %v246_v23 }
  0x29   : > { %377 = vmatpush.msra.mxu0 %v236_v24  ;;  %552 = vmatpush.msra.mxu1 %v236_v24 }
  0x2a   : > { %537 = vmatmul.msk.f32.vlgmr.msra.gmra.mxu0 %vm355_vm2, %v341_v25  ;;  %538 = vmatmul.msk.f32.vlgmr.msra.gmra.mxu1 %vm355_vm2, %v342_v26 }
  0xa7   : > { %v379_v28 = vpop.f32.mrf.mxu0  ;;  %v382_v30 = vpop.f32.mrf.mxu1 }
  0xa8   : > { %v380_v29 = vadd.f32 %v594_v27, %v379_v28  ;;  %v383_v32 = vadd.f32 %v594_v27, %v382_v30 }
  0xaa   : > { %385 = vadd.xlane.f32.xlu0 %v380_v29  ;;  %v391_v31 = vmul.f32 %v380_v29, %v380_v29  ;;  %v392_v33 = vmul.f32 %v383_v32, %v383_v32 }
  0xac   : > { %393 = vadd.xlane.f32.xlu1 %v391_v31 }
  0xb2   : > { %387 = vadd.xlane.f32.xlu0 %v383_v32 }
  0xb4   : > { %395 = vadd.xlane.f32.xlu1 %v392_v33 }
 0x11d   : > { %v386_v34 = vpop.xlane.xlu0 %385 }
 0x11e   : > { %v389_v35 = vmul.f32 0.03125, %v386_v34 }
 0x11f   : > { %v394_v36 = vpop.xlane.xlu1 %393 }
 0x120   : > { %v399_v37 = vmul.f32 %v389_v35, %v389_v35  ;;  %v397_v38 = vmul.f32 0.03125, %v394_v36  ;;  %v405_v57 = vsub.f32 %v380_v29, %v389_v35 }
 0x122   : > { %v401_v39 = vsub.f32 %v397_v38, %v399_v37 }
 0x124   : > { %v403_v40 = vmax.f32 %v401_v39, 0.0 }
 0x125   : > { %v388_v41 = vpop.xlane.xlu0 %387 }
 0x126   : > { %v407_v42 = vadd.f32 1e-05, %v403_v40  ;;  %v390_v43 = vmul.f32 0.03125, %v388_v41 }
 0x127   : > { %v396_v44 = vpop.xlane.xlu1 %395 }
 0x128   : > { %597 = vrsqrt.f32 %v407_v42  ;;  %v400_v45 = vmul.f32 %v390_v43, %v390_v43  ;;  %v398_v46 = vmul.f32 0.03125, %v396_v44  ;;  %vm415_vm4 = vweird.f32 %v407_v42 }
 0x129   : > { %v406_v6 = vsub.f32 %v383_v32, %v390_v43 }
 0x12a   : > { %v402_v47 = vsub.f32 %v398_v46, %v400_v45 }
 0x12c   : > { %v404_v48 = vmax.f32 %v402_v47, 0.0 }
 0x12e   : > { %v598_v49 = vpop.eup %597  ;;  %v408_v51 = vadd.f32 1e-05, %v404_v48 }
 0x12f   : > { %v410_v50 = vmul.f32 %v598_v49, %v407_v42  ;;  %vm416_vm3 = vweird.f32 %v598_v49 }
 0x130   : > { %599 = vrsqrt.f32 %v408_v51  ;;  %vm417_vm5 = vmor %vm415_vm4, %vm416_vm3  ;;  %vm425_vm7 = vweird.f32 %v408_v51 }
 0x131   : > { %v411_v52 = vmul.f32 %v598_v49, %v410_v50 }
 0x133   : > { %v412_v53 = vmul.f32 0.5, %v411_v52 }
 0x135   : > { %v413_v54 = vsub.f32 1.5, %v412_v53 }
 0x136   : > { %v600_v55 = vpop.eup %599 }
 0x137   : > { %v414_v56 = vmul.f32 %v598_v49, %v413_v54  ;;  %v420_v59 = vmul.f32 %v600_v55, %v408_v51  ;;  %vm426_vm6 = vweird.f32 %v600_v55 }
 0x138   : > { %vm427_vm8 = vmor %vm425_vm7, %vm426_vm6 }
 0x139   : > { %v418_v60 = vsel %vm417_vm5, %v598_v49, %v414_v56  ;;  %v421_v62 = vmul.f32 %v600_v55, %v420_v59 }
 0x13a   : > { %v429_v61 = vmul.f32 %v418_v60, %v405_v57 }
 0x13b   : > { %v422_v2 = vmul.f32 0.5, %v421_v62 }
 0x13c   : > { %v435_v1 = vmul.f32 %v595_v58, %v429_v61 }
 0x13d   : > { %v423_v3 = vsub.f32 1.5, %v422_v2 }
 0x13e   : > { %v441_v4 = vadd.f32 %v596_v63, %v435_v1 }
 0x13f   : > { %v424_v5 = vmul.f32 %v600_v55, %v423_v3 }
 0x140   : > { %443 = vst [vmem:[%s223_s29] sm:$0xff] %v441_v4 }
 0x141   : > { %v428_v7 = vsel %vm427_vm8, %v600_v55, %v424_v5 }
 0x142   : > { %v430_v8 = vmul.f32 %v428_v7, %v406_v6 }
 0x144   : > { %v436_v9 = vmul.f32 %v595_v58, %v430_v8 }
 0x146   : > { %v442_v10 = vadd.f32 %v596_v63, %v436_v9 }
 0x148   : > { %444 = vst [vmem:[%s223_s29 + $0x8] sm:$0xff] %v442_v10 }
 0x149   : > { %628 = shalt.err (!%p625_p3)
}
 0x14a   : > { %s665_s16 = smov 128   ;;  %s666_s22 = smov 8  }
 0x14b   : > { %553 = dma.vmem_to_hbm [thread:$0]  (%p745_p5), %s459_s12, 256, %s461_s13, %s446_s2, %s665_s16, %s665_s16, %s666_s22  }
 0x14c PF: > { %p559_p4 = scmp.ge.s32.totalorder %s663_s26, 2  ;;  %s475_s27 = sand.u32 1, %s651_s23  }
 0x14d   : > { %s476_s29 = scalar_lea.sflag [#allocation23], %s475_s27 }
 0x14e   : > { %p556_p7 = pnand %p559_p4, %p749_p6 }
 0x150   : > { %p557_p8 = pneg %p556_p7 }
 0x152   : > { %646 = dma.done.wait (%p557_p8), %s476_s29, 256  }
 0x153   : > { %648 = vsyncadd (%p557_p8), %s476_s29, 4294967040  ;;  %p20_p9 = scmp.ge.s32.totalorder %s732_s28, 4   ;;  %s856_s23 = smov %s655_s24 }
 0x154   : > { %s857_s24 = smov %s659_s25  ;;  %s858_s25 = smov %s743_s7 }
 0x155   : > { %s859_s26 = smov %s732_s28  ;;  %22 = sbr.rel (!%p20_p9) target bundleno = 5 (0x5), region = 89 }
 0x15a   :  { %482 = vsyncpa [#allocation23], 1 }
 0x15b   :  { %484 = vsyncpa [#allocation23 + $0x1], 1 }

</bundles_post_ra>
